<compile_context>
chip_gen: v6e
topology: v6e:2x2x1
jax: 0.10.0
libtpu: 0.0.40
codegen_flags: <defaults>
</compile_context>

<pallas_src>
import math

import jax
import jax.numpy as jnp
from jax.experimental import pallas as pl
from jax.experimental.pallas import tpu as pltpu


def _disc_kernel(b_ref, v_ref, hpl_ref, hmi_ref, out_ref):
    # Per (batch, node-tile) step:
    #   bias : SMEM scalar
    #   v    : (1, n_h)   factored summary vector  W @ c[b]
    #   hpl  : (Nt, n_h)  positive node embeddings (native dtype)
    #   hmi  : (Nt, n_h)  negative node embeddings (native dtype)
    #   out  : (1, 2, Nt) lane-dense score rows [sc1_tile; sc2_tile]
    bias = b_ref[0]
    v = v_ref[0].astype(jnp.float32)                                   # (1, n_h)
    # Inline upcast: h (possibly bf16) * f32 v promotes per-vreg; avoids
    # materializing a full f32 copy of the (Nt, n_h) tile.
    sc1 = jnp.sum(hpl_ref[0] * v, axis=-1, dtype=jnp.float32) + bias   # (Nt,)
    sc2 = jnp.sum(hmi_ref[0] * v, axis=-1, dtype=jnp.float32) + bias   # (Nt,)
    out_ref[0, 0, :] = sc1.astype(out_ref.dtype)
    out_ref[0, 1, :] = sc2.astype(out_ref.dtype)


def _cdiv(a, b):
    return -(-a // b)


def _tpu_budgets():
    """Per-generation tile / VMEM budgets (host-side query at trace time)."""
    kind = ""
    try:
        kind = jax.devices()[0].device_kind.lower()
    except Exception:
        pass
    if "v7" in kind:
        # 64 MiB physical VMEM per TC, ~3.2 TB/s HBM, 2 TensorCores.
        return dict(tile_cap=4 << 20, vmem_limit=48 << 20, buf_count=3, two_tc=True)
    if "v6" in kind:
        # 128 MiB physical VMEM (32 MiB scoped default), ~1.4 TB/s HBM.
        return dict(tile_cap=8 << 20, vmem_limit=80 << 20, buf_count=2, two_tc=False)
    if "v5" in kind and ("lite" in kind or "v5e" in kind):
        # 128 MiB physical (16 MiB scoped default), ~0.8 TB/s HBM.
        return dict(tile_cap=3 << 20, vmem_limit=32 << 20, buf_count=2, two_tc=False)
    # Unknown / older generations: stay conservative, keep scoped defaults.
    return dict(tile_cap=2 << 20, vmem_limit=None, buf_count=2, two_tc=False)


def _pick_node_tile(N, n_h, h_itemsize, tile_cap_bytes, buf_count, vmem_limit_bytes):
    """Node-axis tile size (multiple of 128 when tiling, else the full N).

    Sized from BOTH a per-block cap and the actual pipeline footprint
    (2 h streams x buf_count buffers x block bytes), with headroom for the
    output blocks, v, and compiler scratch.
    """
    row_bytes = max(1, n_h * h_itemsize)
    cap_rows = (tile_cap_bytes // row_bytes) // 128 * 128
    budget = int(vmem_limit_bytes * 0.75) if vmem_limit_bytes else (12 << 20)
    fit_rows = (budget // (2 * buf_count * row_bytes)) // 128 * 128
    nt = max(128, min(cap_rows, fit_rows))
    if N <= nt:
        return N            # single full-extent tile (always layout-legal)
    return nt               # multiple of 128 -> legal (8, 128) block


def _even_grid_tile(N, nt, B, want_even):
    """On 2-TC chips, shrink nt (in multiples of 128) so B * ceil(N/nt) is even."""
    if not want_even:
        return nt
    if (B * _cdiv(N, nt)) % 2 == 0:
        return nt
    cand = min((nt // 128) * 128, (N // 128) * 128)
    while cand >= 128:
        if (B * _cdiv(N, cand)) % 2 == 0:
            return cand
        cand -= 128
    return nt


def hetero_discriminator(c, h_pl, h_mi, weight, bias,
                         s_bias1=None, s_bias2=None, node_tile=None):
    """Pallas implementation of HeteroDiscriminator.forward.

    c:      (B, n_h)      summary vectors
    h_pl:   (B, N, n_h)   positive node embeddings
    h_mi:   (B, N, n_h)   negative (shuffled) node embeddings
    weight: (n_h, n_h)    nn.Bilinear weight[0]
    bias:   scalar        nn.Bilinear bias[0]
    node_tile: optional override for the node-axis tile (testing / tuning);
               must be a multiple of 128 (or >= N).
    returns (logits, label), each (B, 2N) float32
    """
    B, N, n_h = h_pl.shape
    assert c.shape == (B, n_h)
    assert h_mi.shape == (B, N, n_h)

    budgets = _tpu_budgets()

    # Factor the bilinear form (tiny matmul, plain JAX):
    #   v[b, i] = sum_j W[i, j] * c[b, j]   =>   sc[b, n] = <h[b, n, :], v[b, :]>
    v = jnp.einsum("ij,bj->bi", weight.astype(jnp.float32), c.astype(jnp.float32))
    v3 = v.reshape(B, 1, n_h)
    bias_arr = jnp.asarray(bias, jnp.float32).reshape(1)

    itemsize = jnp.dtype(h_pl.dtype).itemsize
    if node_tile is None:
        nt = _pick_node_tile(N, n_h, itemsize, budgets["tile_cap"],
                             budgets["buf_count"], budgets["vmem_limit"])
        nt = _even_grid_tile(N, nt, B, budgets["two_tc"])
    else:
        nt = N if node_tile >= N else node_tile
    n_tiles = _cdiv(N, nt)

    # Optional 3-deep pipelining of the h streams on v7x (only when the grid is
    # long enough to benefit).
    h_spec_kwargs = {}
    if budgets["buf_count"] > 2 and B * n_tiles >= budgets["buf_count"]:
        h_spec_kwargs["pipeline_mode"] = pl.Buffered(budgets["buf_count"])
    h_spec = pl.BlockSpec((1, nt, n_h), lambda b, t: (b, t, 0), **h_spec_kwargs)

    cp_kwargs = dict(dimension_semantics=("parallel", "parallel"))
    if budgets["vmem_limit"] is not None:
        cp_kwargs["vmem_limit_bytes"] = budgets["vmem_limit"]

    scores = pl.pallas_call(
        _disc_kernel,
        out_shape=jax.ShapeDtypeStruct((B, 2, N), jnp.float32),
        grid_spec=pltpu.PrefetchScalarGridSpec(
            num_scalar_prefetch=0,
            # B outer, node-tile inner: the v block stays resident across the
            # inner node-tile loop (no re-DMA of v per tile).
            grid=(B, n_tiles),
            in_specs=[
                pl.BlockSpec(memory_space=pltpu.MemorySpace.SMEM),   # bias
                pl.BlockSpec((1, 1, n_h), lambda b, t: (b, 0, 0)),   # v
                h_spec,                                              # h_pl
                h_spec,                                              # h_mi
            ],
            out_specs=pl.BlockSpec((1, 2, nt), lambda b, t: (b, 0, t)),
        ),
        compiler_params=pltpu.CompilerParams(**cp_kwargs),
    )(bias_arr, v3, h_pl, h_mi)

    # (B, 2, N) row-major flattens to exactly concat(sc1, sc2) along axis 1.
    logits = scores.reshape(B, 2 * N)

    # label is a compile-time constant -> built outside the kernel.
    label = jnp.concatenate(
        [jnp.ones((B, N), jnp.float32), jnp.zeros((B, N), jnp.float32)], axis=1)

    # Optional additive score biases (plain-JAX epilogue, matches torch semantics).
    if s_bias1 is not None:
        logits = logits.at[:, :N].add(s_bias1)
    if s_bias2 is not None:
        logits = logits.at[:, N:].add(s_bias2)
    return logits, label


def _reference(c, h_pl, h_mi, weight, bias):
    h_pl = h_pl.astype(jnp.float32)
    h_mi = h_mi.astype(jnp.float32)
    c = c.astype(jnp.float32)
    sc1 = jnp.einsum("bni,ij,bj->bn", h_pl, weight, c) + bias
    sc2 = jnp.einsum("bni,ij,bj->bn", h_mi, weight, c) + bias
    logits = jnp.concatenate([sc1, sc2], axis=1)
    label = jnp.concatenate([jnp.ones_like(sc1), jnp.zeros_like(sc2)], axis=1)
    return logits, label


def _xavier_bilinear_weight(key, n_h, dtype=jnp.float32):
    # nn.Bilinear(n_h, n_h, 1): weight (1, n_h, n_h) xavier_uniform, bias = 0.
    a = math.sqrt(6.0 / (n_h * n_h + n_h))
    return jax.random.uniform(key, (n_h, n_h), minval=-a, maxval=a, dtype=dtype)


if __name__ == "__main__":
    key = jax.random.PRNGKey(0)

    # ---- Test 1: small f32 shapes consistent with the module ----
    B, N, n_h = 2, 8, 32
    kc, kp, km, kw = jax.random.split(key, 4)
    c = jax.random.normal(kc, (B, n_h), dtype=jnp.float32)
    h_pl = jax.random.normal(kp, (B, N, n_h), dtype=jnp.float32)
    h_mi = jax.random.normal(km, (B, N, n_h), dtype=jnp.float32)
    weight = _xavier_bilinear_weight(kw, n_h)
    bias = jnp.float32(0.0)

    logits, label = hetero_discriminator(c, h_pl, h_mi, weight, bias)
    jax.block_until_ready((logits, label))
    ref_logits, ref_label = _reference(c, h_pl, h_mi, weight, bias)
    assert logits.shape == (B, 2 * N) and label.shape == (B, 2 * N)
    assert jnp.allclose(logits, ref_logits, atol=1e-4, rtol=1e-4)
    assert jnp.allclose(label, ref_label)

    # ---- Test 2: bf16 inputs, ragged node axis, forced small tile to exercise
    # the cdiv grid + masked boundary store path ----
    B2, N2, n_h2 = 2, 300, 128
    kc2, kp2, km2, kw2 = jax.random.split(jax.random.PRNGKey(1), 4)
    c2 = jax.random.normal(kc2, (B2, n_h2), dtype=jnp.float32)
    h_pl2 = jax.random.normal(kp2, (B2, N2, n_h2), dtype=jnp.bfloat16)
    h_mi2 = jax.random.normal(km2, (B2, N2, n_h2), dtype=jnp.bfloat16)
    weight2 = _xavier_bilinear_weight(kw2, n_h2)
    bias2 = jnp.float32(0.1)

    logits2, label2 = hetero_discriminator(c2, h_pl2, h_mi2, weight2, bias2,
                                           node_tile=128)
    jax.block_until_ready((logits2, label2))
    ref_logits2, ref_label2 = _reference(c2, h_pl2, h_mi2, weight2, bias2)
    assert logits2.shape == (B2, 2 * N2) and label2.shape == (B2, 2 * N2)
    assert jnp.allclose(logits2, ref_logits2, atol=1e-2, rtol=1e-2)
    assert jnp.allclose(label2, ref_label2)

    print("KERNEL_OK")
</pallas_src>

<mosaic_0001>
module attributes {stable_mosaic.version = 11 : i64} {
  func.func @_disc_kernel(%arg0: i32, %arg1: i32, %arg2: memref<1xf32, #tpu.memory_space<smem>>, %arg3: memref<1x1x32xf32, #tpu.memory_space<vmem>>, %arg4: memref<1x8x32xf32, #tpu.memory_space<vmem>>, %arg5: memref<1x8x32xf32, #tpu.memory_space<vmem>>, %arg6: memref<1x2x8xf32, #tpu.memory_space<vmem>>) attributes {dimension_semantics = [#tpu.dimension_semantics<parallel>, #tpu.dimension_semantics<parallel>], iteration_bounds = array<i64: 2, 1>, scalar_prefetch = 0 : i64, scratch_operands = 0 : i64, tpu.core_type = #tpu.core_type<tc>, window_params = [{transform_indices = @transform_0, window_bounds = array<i64: 1>}, {transform_indices = @transform_1, window_bounds = array<i64: 1, 1, 32>}, {transform_indices = @transform_2, window_bounds = array<i64: 1, 8, 32>}, {transform_indices = @transform_3, window_bounds = array<i64: 1, 8, 32>}, {transform_indices = @transform_4, window_bounds = array<i64: 1, 2, 8>}]} {
    %c0 = arith.constant 0 : index
    %0 = memref.load %arg2[%c0] : memref<1xf32, #tpu.memory_space<smem>>
    %c0_0 = arith.constant 0 : index
    %c0_1 = arith.constant 0 : index
    %c0_2 = arith.constant 0 : index
    %1 = vector.load %arg3[%c0_0, %c0_1, %c0_2] : memref<1x1x32xf32, #tpu.memory_space<vmem>>, vector<1x1x32xf32>
    %2 = vector.shape_cast %1 : vector<1x1x32xf32> to vector<1x32xf32>
    %c0_3 = arith.constant 0 : index
    %c0_4 = arith.constant 0 : index
    %c0_5 = arith.constant 0 : index
    %3 = vector.load %arg4[%c0_3, %c0_4, %c0_5] : memref<1x8x32xf32, #tpu.memory_space<vmem>>, vector<1x8x32xf32>
    %4 = vector.shape_cast %3 : vector<1x8x32xf32> to vector<8x32xf32>
    %5 = vector.broadcast %2 : vector<1x32xf32> to vector<8x32xf32>
    %6 = arith.mulf %4, %5 : vector<8x32xf32>
    %cst = arith.constant dense<0.000000e+00> : vector<8xf32>
    %7 = vector.multi_reduction <add>, %6, %cst [1] : vector<8x32xf32> to vector<8xf32>
    %8 = vector.broadcast %0 : f32 to vector<8xf32>
    %9 = arith.addf %7, %8 : vector<8xf32>
    %c0_6 = arith.constant 0 : index
    %c0_7 = arith.constant 0 : index
    %c0_8 = arith.constant 0 : index
    %10 = vector.load %arg5[%c0_6, %c0_7, %c0_8] : memref<1x8x32xf32, #tpu.memory_space<vmem>>, vector<1x8x32xf32>
    %11 = vector.shape_cast %10 : vector<1x8x32xf32> to vector<8x32xf32>
    %12 = vector.broadcast %2 : vector<1x32xf32> to vector<8x32xf32>
    %13 = arith.mulf %11, %12 : vector<8x32xf32>
    %cst_9 = arith.constant dense<0.000000e+00> : vector<8xf32>
    %14 = vector.multi_reduction <add>, %13, %cst_9 [1] : vector<8x32xf32> to vector<8xf32>
    %15 = vector.broadcast %0 : f32 to vector<8xf32>
    %16 = arith.addf %14, %15 : vector<8xf32>
    %c0_10 = arith.constant 0 : index
    %c0_11 = arith.constant 0 : index
    %c0_12 = arith.constant 0 : index
    %17 = vector.load %arg6[%c0_10, %c0_11, %c0_12] : memref<1x2x8xf32, #tpu.memory_space<vmem>>, vector<1x1x8xf32>
    %18 = vector.shape_cast %17 : vector<1x1x8xf32> to vector<8xf32>
    %19 = vector.shape_cast %9 : vector<8xf32> to vector<1x1x8xf32>
    tpu.vector_store %arg6[%c0_10, %c0_11, %c0_12], %19 {strides = array<i32>} : memref<1x2x8xf32, #tpu.memory_space<vmem>>, vector<1x1x8xf32>,
    %c0_13 = arith.constant 0 : index
    %c1 = arith.constant 1 : index
    %c0_14 = arith.constant 0 : index
    %20 = vector.load %arg6[%c0_13, %c1, %c0_14] : memref<1x2x8xf32, #tpu.memory_space<vmem>>, vector<1x1x8xf32>
    %21 = vector.shape_cast %20 : vector<1x1x8xf32> to vector<8xf32>
    %22 = vector.shape_cast %16 : vector<8xf32> to vector<1x1x8xf32>
    tpu.vector_store %arg6[%c0_13, %c1, %c0_14], %22 {strides = array<i32>} : memref<1x2x8xf32, #tpu.memory_space<vmem>>, vector<1x1x8xf32>,
    return
  }
  func.func @transform_0(%arg0: i32, %arg1: i32) -> i32 {
    %c0_i32 = arith.constant 0 : i32
    %c0_i32_0 = arith.constant 0 : i32
    return %c0_i32 : i32
  }
  func.func @transform_1(%arg0: i32, %arg1: i32) -> (i32, i32, i32) {
    %c0_i32 = arith.constant 0 : i32
    %c0_i32_0 = arith.constant 0 : i32
    %c0_i32_1 = arith.constant 0 : i32
    return %arg0, %c0_i32, %c0_i32_0 : i32, i32, i32
  }
  func.func @transform_2(%arg0: i32, %arg1: i32) -> (i32, i32, i32) {
    %c0_i32 = arith.constant 0 : i32
    %c0_i32_0 = arith.constant 0 : i32
    return %arg0, %arg1, %c0_i32 : i32, i32, i32
  }
  func.func @transform_3(%arg0: i32, %arg1: i32) -> (i32, i32, i32) {
    %c0_i32 = arith.constant 0 : i32
    %c0_i32_0 = arith.constant 0 : i32
    return %arg0, %arg1, %c0_i32 : i32, i32, i32
  }
  func.func @transform_4(%arg0: i32, %arg1: i32) -> (i32, i32, i32) {
    %c0_i32 = arith.constant 0 : i32
    %c0_i32_0 = arith.constant 0 : i32
    return %arg0, %c0_i32, %arg1 : i32, i32, i32
  }
}

</mosaic_0001>

<bundles_post_ra>
// kernel: tpu_custom_call.1
= control target key start
LH: loop header
LB: loop body
LE: loop exit
PB: predicated region body
PF: predicated region fallthrough
CT: control target
= control target key end

     0   :  { %s876_s0 = inlined_call_operand.<no memory space> [shape: f32[1], index: 0, kind: input, shape index: {}]   ;;  %s877_s1 = inlined_call_operand.vmem [shape: f32[2,1,32], index: 1, kind: input, shape index: {}]   ;;  %s878_s2 = inlined_call_operand.hbm [shape: f32[2,8,32], index: 2, kind: input, shape index: {}]   ;;  %s879_s3 = inlined_call_operand.hbm [shape: f32[2,8,32], index: 3, kind: input, shape index: {}]   ;;  %s880_s4 = inlined_call_operand.hbm [shape: f32[2,2,8], index: 4, kind: output, shape index: {}]  }
   0x1   :  { %9 = sst [smem:[#allocation2]] %s876_s0 }
   0x2   :  { %10 = vsyncpa [#allocation4], 0 }
   0x3   :  { %12 = vsyncpa [#allocation4 + $0x1], 0 }
   0x4   :  { %13 = vsyncpa [#allocation7], 0 }
   0x5   :  { %15 = vsyncpa [#allocation7 + $0x1], 0 }
   0x6   :  { %16 = vsyncpa [#allocation5], 0 }
   0x7   :  { %18 = vsyncpa [#allocation5 + $0x1], 0  ;;  %s709_s17 = smov 0   ;;  %s711_s18 = smov 0  }
   0x8   :  { %s713_s19 = smov 0   ;;  %s715_s20 = smov 0  }
   0x9   :  { %s717_s21 = smov 0   ;;  %s719_s22 = smov 0  }
   0xa LB: > { %s452_s0 = sadd.s32 4294967295, %s676_s22   ;;  %s453_s23 = sadd.s32 4294967294, %s676_s22   ;;  %s676_s22 = sphi %s719_s22, %s24_s22   ;;  %s672_s21 = sphi %s717_s21, %s892_s21   ;;  %s668_s20 = sphi %s715_s20, %s891_s20   ;;  %s664_s19 = sphi %s713_s19, %s890_s19   ;;  %s660_s18 = sphi %s711_s18, %s889_s18   ;;  %s656_s17 = sphi %s709_s17, %s888_s17  }
   0xb   : > { %s36_s24 = sadd.s32 1, %s672_s21  ;;  %s92_s25 = sadd.s32 1, %s664_s19 }
   0xc   : > { %p38_p0 = scmp.ge.s32.totalorder %s36_s24, 2  ;;  %p99_p1 = scmp.ne.s32.totalorder %s664_s19, %s660_s18 }
   0xd   : > { %p100_p2 = scmp.eq.s32.totalorder %s676_s22, 0  ;;  %p105_p3 = scmp.ne.s32.totalorder %s660_s18, %s656_s17 }
   0xe   : > { %s894_s24 = smov (%p38_p0, %s36_s24), 0  ;;  %p106_p5 = scmp.eq.s32.totalorder %s452_s0, 0 }
   0xf   : > { %p750_p4 = por %p100_p2, %p99_p1  ;;  %s87_s27 = ssub.s32 %s672_s21, %s894_s24 }
  0x10   : > { %p159_p6 = scmp.eq.s32.totalorder %s452_s0, 1  ;;  %p90_p7 = scmp.eq.s32.totalorder %s87_s27, 0 }
  0x11   : > { %p756_p8 = por %p106_p5, %p105_p3  ;;  %p165_p10 = scmp.eq.s32.totalorder %s453_s23, 1 }
  0x12   : > { %p760_p9 = por %p159_p6, %p99_p1  ;;  %p486_p13 = scmp.lt.s32.totalorder %s676_s22, 2 }
  0x13   : > { %s765_s30 = scalar_select %p90_p7, %s664_s19, %s92_s25  }
  0x14   : > { %p767_p11 = por %p165_p10, %p105_p3  ;;  %s774_s6 = sand.u32 1, %s664_s19  }
  0x15   : > { %s456_s7 = sshll.u32 %s774_s6, 3  ;;  %s457_s8 = sshll.u32 %s672_s21, 7 }
  0x16   : > { %s204_s11 = scalar_lea.hbm %s878_s2, %s457_s8  ;;  %s198_s12 = scalar_lea.vmem [#allocation3], %s456_s7 }
  0x17   : > { %s206_s13 = sshll.u32 %s198_s12, 4  ;;  %p783_p0 = pnand %p486_p13, %p750_p4  ;;  %s207_s13 = int_to_ptr.vmem [resolvable:$true] %s206_s13 }
  0x18   : > { %p460_p1 = scmp.ge.s32.totalorder %s676_s22, 1  ;;  %p230_p2 = scmp.lt.s32.totalorder %s676_s22, 3 }
  0x19   : > { %s195_s15 = scalar_lea.sflag [#allocation4], %s774_s6  ;;  %p538_p3 = pneg %p783_p0 }
  0x1a   : > { %s549_s16 = scalar_lea.vmem %s207_s13, 128  ;;  %s678_s0 = smov [#allocation3]  }
  0x1b   : > { %p550_p5 = scmp.ne.s32.totalorder %s207_s13, %s549_s16  ;;  %s554_s23 = sshll.u32 %s678_s0, 4  ;;  %s555_s23 = int_to_ptr.vmem [resolvable:$false] %s554_s23 }
  0x1c   : > { %s556_s25 = scalar_lea.vmem %s555_s23, 256  ;;  %p557_p4 = scmp.lt.s32.totalorder %s207_s13, %s555_s23 }
  0x1d   : > { %p552_p6 = pnand %p550_p5, %p538_p3  ;;  %p558_p10 = scmp.lt.s32.totalorder %s556_s25, %s549_s16 }
  0x1f   : > { %p553_p7 = pneg %p552_p6  ;;  %p559_p13 = por %p558_p10, %p557_p4 }
  0x21   : > { %p560_p12 = pnand %p559_p13, %p553_p7 }
  0x23   : > { %563 = shalt.err (!%p560_p12)
}
  0x24   : > { %478 = dma.hbm_to_vmem [thread:$0]  (!%p783_p0), %s204_s11, 128, %s207_s13, %s195_s15  }
  0x25   : > { %p801_p5 = pnand %p460_p1, %p230_p2  ;;  %s223_s10 = scalar_lea.hbm %s879_s3, %s457_s8 }
  0x26   : > { %s217_s12 = scalar_lea.vmem [#allocation6], %s456_s7  ;;  %s214_s0 = scalar_lea.sflag [#allocation7], %s774_s6 }
  0x27   : > { %s225_s16 = sshll.u32 %s217_s12, 4  ;;  %s679_s11 = smov [#allocation6]   ;;  %s226_s16 = int_to_ptr.vmem [resolvable:$true] %s225_s16 }
  0x28   : > { %s577_s23 = scalar_lea.vmem %s226_s16, 128  ;;  %s582_s13 = sshll.u32 %s679_s11, 4  ;;  %s583_s13 = int_to_ptr.vmem [resolvable:$false] %s582_s13 }
  0x29   : > { %p578_p12 = scmp.ne.s32.totalorder %s226_s16, %s577_s23  ;;  %s584_s15 = scalar_lea.vmem %s583_s13, 256 }
  0x2a   : > { %p585_p1 = scmp.lt.s32.totalorder %s226_s16, %s583_s13  ;;  %p586_p2 = scmp.lt.s32.totalorder %s584_s15, %s577_s23 }
  0x2b   : > { %p580_p6 = pnand %p578_p12, %p538_p3 }
  0x2c   : > { %p587_p4 = por %p586_p2, %p585_p1 }
  0x2d   : > { %p581_p7 = pneg %p580_p6 }
  0x2f   : > { %p588_p10 = pnand %p587_p4, %p581_p7 }
  0x31   : > { %591 = shalt.err (!%p588_p10)
}
  0x32   : > { %481 = dma.hbm_to_vmem [thread:$0]  (!%p783_p0), %s223_s10, 128, %s226_s16, %s214_s0  }
  0x33   : > { %234 = sbr.rel (%p801_p5) target bundleno = 227 (0xe3), region = 36  ;;  %s817_s6 = sand.u32 (!%p801_p5), 1, %s660_s18  }
  0x34   : > { %s461_s7 = sshll.u32 (!%p801_p5), %s817_s6, 3  ;;  %s237_s8 = scalar_lea.sflag (!%p801_p5), [#allocation4], %s817_s6 }
  0x35   : > { %s240_s25 = scalar_lea.vmem (!%p801_p5), [#allocation3], %s461_s7 }
  0x38   : > { %643 = dma.done.wait (%p756_p8), %s237_s8, 128  }
  0x39   : > { %645 = vsyncadd (%p756_p8), %s237_s8, 4294967168  ;;  %s246_s14 = scalar_lea.sflag [#allocation7], %s817_s6  ;;  %s249_s27 = scalar_lea.vmem [#allocation6], %s461_s7 }
  0x3a   : > { %647 = dma.done.wait (%p756_p8), %s246_s14, 128  }
  0x3b   : > { %649 = vsyncadd (%p756_p8), %s246_s14, 4294967168  ;;  %p282_p0 = scmp.lt.s32.totalorder %s668_s20, 1  ;;  %v287_v1 = vld [vmem:[%s240_s25] sm:$0xff]  ;;  %vm295_vm0 = vcmask 261120   ;;  %v301_v2 = vld [vmem:[%s249_s27] sm:$0xff]  ;;  %s285_s28 = sld [smem:[#allocation2]]  ;;  %v308_v7 = vlaneseq }
  0x3c   : > { %s463_s16 = sshll.u32 %s817_s6, 1  ;;  %vm315_vm1 = vcmask 57344   ;;  %s466_s0 = sshll.u32 %s668_s20, 5 }
  0x3d   : > { %s283_s26 = scalar_select %p282_p0, %s668_s20, 1  ;;  %v309_v8 = vand.u32 127, %v308_v7  ;;  %v311_v9 = vshrl.u32 %v308_v7, 7 }
  0x3e   : > { %s281_s23 = scalar_lea.vmem [#allocation8], %s463_s16  ;;  %s337_s7 = scalar_lea.hbm %s880_s4, %s466_s0 }
  0x3f   : > { %s284_s12 = scalar_lea.vmem %s877_s1, %s283_s26  ;;  %v312_v11 = vsub.s32 %v309_v8, %v311_v9  ;;  %s339_s11 = sshll.u32 %s281_s23, 4  ;;  %s340_s11 = int_to_ptr.vmem [resolvable:$true] %s339_s11 }
  0x40   : > { %v464_v0 = vld [vmem:[%s284_s12] ss:$0 sm:$0xff]  ;;  %s325_s8 = scalar_lea.sflag [#allocation5], %s817_s6  ;;  %s592_s25 = scalar_lea.vmem %s340_s11, 32 }
  0x41   : > { %v294_v3 = vmul.f32 %v464_v0, %v287_v1  ;;  %v302_v4 = vmul.f32 %v464_v0, %v301_v2  ;;  %v299_v10 = vstv %s285_s28  ;;  %p593_p8 = scmp.ne.s32.totalorder %s340_s11, %s592_s25  ;;  %s680_s14 = smov [#allocation8]  }
  0x42   : > { %s596_s27 = sshll.u32 %s680_s14, 4  ;;  %s597_s27 = int_to_ptr.vmem [resolvable:$false] %s596_s27 }
  0x43   : > { %v296_v5 = vsel %vm295_vm0, %v294_v3, 0.0  ;;  %v303_v6 = vsel %vm295_vm0, %v302_v4, 0.0  ;;  %p594_p3 = pnand %p593_p8, %p760_p9  ;;  %s598_s20 = scalar_lea.vmem %s597_s27, 64 }
  0x44   : > { %297 = vadd.xlane.f32.xlu0 %v296_v5  ;;  %p599_p5 = scmp.lt.s32.totalorder %s340_s11, %s597_s27  ;;  %p600_p12 = scmp.lt.s32.totalorder %s598_s20, %s592_s25 }
  0x45   : > { %p595_p13 = pneg %p594_p3 }
  0x46   : > { %p601_p6 = por %p600_p12, %p599_p5 }
  0x48   : > { %304 = vadd.xlane.f32.xlu0 %v303_v6  ;;  %p602_p7 = pnand %p601_p6, %p595_p13 }
  0xcd   : > { %v298_v12 = vpop.xlane.xlu0 %297 }
  0xce   : > { %v300_v13 = vadd.f32 %v299_v10, %v298_v12 }
  0xd0   : > { %v313_v14 = vrot.slane %v300_v13, %v312_v11 }
  0xd1   : > { %v305_v15 = vpop.xlane.xlu0 %304 }
  0xd2   : > { %v306_v16 = vadd.f32 %v305_v15, %v299_v10  ;;  %316 = vst.msk [vmem:[%s281_s23] sm:$0x1] %vm315_vm1, %v313_v14 }
  0xd4   : > { %v321_v17 = vrot.slane %v306_v16, %v312_v11 }
  0xd6   : > { %323 = vst.msk [vmem:[%s281_s23 + $0x1] sm:$0x1] %vm315_vm1, %v321_v17 }
  0xd7   : > { %605 = shalt.err (!%p602_p7)
}
  0xd8   : > { %s606_s26 = scalar_lea.hbm %s337_s7, 32  ;;  %s610_s10 = scalar_lea.hbm %s880_s4, 64 }
  0xd9   : > { %p607_p1 = scmp.ne.s32.totalorder %s337_s7, %s606_s26  ;;  %p611_p10 = scmp.lt.s32.totalorder %s337_s7, %s880_s4 }
  0xda   : > { %p612_p0 = scmp.lt.s32.totalorder %s610_s10, %s606_s26 }
  0xdb   : > { %p608_p2 = pnand %p607_p1, %p760_p9 }
  0xdc   : > { %p613_p8 = por %p612_p0, %p611_p10 }
  0xdd   : > { %p609_p4 = pneg %p608_p2 }
  0xdf   : > { %p614_p3 = pnand %p613_p8, %p609_p4 }
  0xe1   : > { %617 = shalt.err (!%p614_p3)
}
  0xe2   : > { %473 = dma.vmem_to_hbm [thread:$0]  (%p760_p9), %s340_s11, 32, %s337_s7, %s325_s8  }
  0xe3 PF: > { %s351_s16 = sand.u32 1, %s656_s17   ;;  %p887_p13 = scmp.ge.s32.totalorder %s676_s22, 2 }
  0xe4   : > { %s352_s0 = scalar_lea.sflag [#allocation5], %s351_s16 }
  0xe5   : > { %p483_p5 = pnand %p887_p13, %p767_p11 }
  0xe7   : > { %p484_p12 = pneg %p483_p5 }
  0xe9   : > { %651 = dma.done.wait (%p484_p12), %s352_s0, 32  }
  0xea   : > { %653 = vsyncadd (%p484_p12), %s352_s0, 4294967264  ;;  %s24_s22 = sadd.s32 1, %s676_s22   ;;  %s888_s17 = smov %s660_s18 }
  0xeb   : > { %p21_p6 = scmp.ge.s32.totalorder %s24_s22, 4   ;;  %s889_s18 = smov %s664_s19 }
  0xec   : > { %s890_s19 = smov %s765_s30  ;;  %s891_s20 = smov %s672_s21 }
  0xed   : > { %s892_s21 = smov %s894_s24  ;;  %23 = sbr.rel (!%p21_p6) target bundleno = 10 (0xa), region = 97 }
  0xf2   :  { %357 = vsyncpa [#allocation4], 1 }
  0xf3   :  { %359 = vsyncpa [#allocation4 + $0x1], 1 }
  0xf4   :  { %360 = vsyncpa [#allocation7], 1 }
  0xf5   :  { %362 = vsyncpa [#allocation7 + $0x1], 1 }
  0xf6   :  { %363 = vsyncpa [#allocation5], 1 }
  0xf7   :  { %365 = vsyncpa [#allocation5 + $0x1], 1 }

</bundles_post_ra>
